<compile_context>
chip_gen: v5e
topology: v5e:2x2
jax: 0.10.0
libtpu: 0.0.40
codegen_flags: <defaults>
</compile_context>

<pallas_src>
import functools

import jax
import jax.numpy as jnp
from jax.experimental import pallas as pl
from jax.experimental.pallas import tpu as pltpu


def _round_up(x, m):
    return (x + m - 1) // m * m


# ---------------------------------------------------------------------------
# Generation-aware VMEM budgeting / tile selection
# ---------------------------------------------------------------------------
def _vmem_budget_bytes():
    """~100 MiB on 128-MiB VMEM parts (v5e/v6e); ~56 MiB on v7x (64 MiB / TC)."""
    try:
        cap = int(pltpu.get_tpu_info().vmem_capacity_bytes)
    except Exception:
        cap = 64 << 20  # conservative fallback: treat as a 64 MiB part
    return (100 << 20) if cap >= (100 << 20) else (56 << 20)


def _adapter_vmem_bytes(tn, d, ah_pad, io_bytes, mm_bytes):
    # double-buffered streamed x/out tiles + (conservatively) double-buffered
    # resident weights + f32 activations + matmul-dtype cast temporaries.
    tiles = 2 * 2 * tn * d * io_bytes
    weights = 2 * (2 * d * ah_pad * mm_bytes + (ah_pad + 3 * d) * 4)
    acts = tn * (ah_pad + d) * 4 + tn * (ah_pad + d) * mm_bytes
    return tiles + weights + acts


def _select_tile_rows(d, ah_pad, io_bytes, mm_bytes, tile_rows, budget):
    """Largest row tile such that full double-buffering fits in ~75% of budget."""
    per_row = 2 * 2 * d * io_bytes + (ah_pad + d) * (4 + mm_bytes)
    fixed = 2 * (2 * d * ah_pad * mm_bytes + (ah_pad + 3 * d) * 4)
    cap = max((int(budget * 0.75) - fixed) // per_row, 8)
    cap = int(cap) // 8 * 8
    return max(min(tile_rows, cap), 8)


# ---------------------------------------------------------------------------
# Pallas kernel: fused adapter hot path (down -> GELU -> up -> LN -> residual)
# ---------------------------------------------------------------------------
def _adapter_kernel(x_ref, wd_ref, bd_ref, wu_ref, bu_ref, g_ref, beta_ref,
                    o_ref, *, apply_layer_norm):
    x = x_ref[...]                                   # (TN, D) io dtype
    mm_dtype = wd_ref.dtype                          # weights pre-cast in wrapper

    # down-sampler: x @ Wd^T + bd   (Wd^T laid out (D, AH_pad), lane-dense)
    h = (jnp.dot(x.astype(mm_dtype), wd_ref[...],
                 preferred_element_type=jnp.float32) + bd_ref[...])
    # exact GELU (torch.nn.GELU default, approximate='none') -- f32, EUP erf
    h = 0.5 * h * (1.0 + jax.lax.erf(h * jnp.float32(0.7071067811865476)))
    # up-sampler: h @ Wu^T + bu
    y = (jnp.dot(h.astype(mm_dtype), wu_ref[...],
                 preferred_element_type=jnp.float32) + bu_ref[...])

    if apply_layer_norm:
        d = y.shape[-1]
        inv_d = jnp.float32(1.0 / d)
        mean = jnp.sum(y, axis=-1, keepdims=True) * inv_d
        yc = y - mean
        var = jnp.sum(yc * yc, axis=-1, keepdims=True) * inv_d
        y = yc * jax.lax.rsqrt(var + jnp.float32(1e-5))
        y = y * g_ref[...] + beta_ref[...]

    o_ref[...] = (y + x.astype(jnp.float32)).astype(o_ref.dtype)   # residual


def adapter_forward(x2d, wd_t, bd, wu_t, bu, ln_w, ln_b, *,
                    apply_layer_norm=True, tile_rows=1024):
    """x2d: (N, D); wd_t: (D, AH_pad); bd: (1, AH_pad); wu_t: (AH_pad, D);
    bu/ln_w/ln_b: (1, D).  Weights already in the desired matmul dtype."""
    n, d = x2d.shape
    ah_pad = wd_t.shape[1]
    io_dtype = x2d.dtype
    io_bytes = jnp.dtype(io_dtype).itemsize
    mm_bytes = jnp.dtype(wd_t.dtype).itemsize

    budget = _vmem_budget_bytes()
    tile_rows = _select_tile_rows(d, ah_pad, io_bytes, mm_bytes, tile_rows, budget)

    # Balanced tiling over tokens: minimize tail padding and guarantee at least
    # two (and an even number of) tiles so both v7x TensorCores are busy.
    n8 = _round_up(n, 8)
    num_tiles = pl.cdiv(n8, tile_rows)
    if num_tiles == 1 and n8 >= 16:
        num_tiles = 2
    if num_tiles > 1 and num_tiles % 2 == 1:
        num_tiles += 1
    tn = _round_up(pl.cdiv(n, num_tiles), 8)
    n_pad = num_tiles * tn

    if n_pad != n:
        # TODO(synk): replace this (rare, small) pad copy with last-block masking.
        x2d = jnp.pad(x2d, ((0, n_pad - n), (0, 0)))

    vmem_limit = int(min(max(2 * _adapter_vmem_bytes(tn, d, ah_pad, io_bytes,
                                                     mm_bytes), 32 << 20),
                         budget))

    kernel = functools.partial(_adapter_kernel, apply_layer_norm=apply_layer_norm)

    out = pl.pallas_call(
        kernel,
        out_shape=jax.ShapeDtypeStruct((n_pad, d), io_dtype),
        grid=(num_tiles,),
        in_specs=[
            pl.BlockSpec((tn, d), lambda i: (i, 0)),        # x: streamed tiles
            pl.BlockSpec(wd_t.shape, lambda i: (0, 0)),     # weights: VMEM-resident
            pl.BlockSpec(bd.shape, lambda i: (0, 0)),
            pl.BlockSpec(wu_t.shape, lambda i: (0, 0)),
            pl.BlockSpec(bu.shape, lambda i: (0, 0)),
            pl.BlockSpec(ln_w.shape, lambda i: (0, 0)),
            pl.BlockSpec(ln_b.shape, lambda i: (0, 0)),
        ],
        out_specs=pl.BlockSpec((tn, d), lambda i: (i, 0)),
        compiler_params=pltpu.CompilerParams(
            dimension_semantics=("parallel",),              # megacore / 2-TC sharding
            vmem_limit_bytes=vmem_limit,
        ),
    )(x2d, wd_t, bd, wu_t, bu, ln_w, ln_b)

    return out[:n] if n_pad != n else out


# ---------------------------------------------------------------------------
# Hypernet (plain XLA): tiny matmul chain + dict lookups, no Pallas launch
# ---------------------------------------------------------------------------
def _slice_slab(slab, *, input_dim, adapter_hidden):
    """Split the (1, TOTAL) generator slab into adapter weights (pre-transposed)."""
    d, ah = input_dim, adapter_hidden
    sizes = (d * ah, ah, ah * d, d, d, d)
    o, segs = 0, []
    for nseg in sizes:
        segs.append(slab[:, o:o + nseg])
        o += nseg
    dw_t = segs[0].reshape(d, ah)     # Wd^T  (D, AH)
    bd = segs[1]                      # (1, AH)
    uw_t = segs[2].reshape(ah, d)     # Wu^T  (AH, D)
    bu, lw, lb = segs[3], segs[4], segs[5]   # (1, D) each
    return dw_t, bd, uw_t, bu, lw, lb


def hypernet_forward(params, task_name, layer_id, position_id, *,
                     input_dim, adapter_hidden):
    # AdapterHyperNet.get_embedding: embedding lookups + concat
    task_emb = params["task_to_embeddings"][task_name]                 # (tei,)
    layer_emb = params["layer_id_embeddings"][layer_id]                # (tei,)
    pos_emb = params["position_id_embeddings"][position_id]            # (tei,)
    emb_cat = jnp.concatenate([task_emb, layer_emb, pos_emb]).reshape(1, -1)

    teh = params["task_embedding_hypernet"]
    emb = emb_cat @ teh["wt"] + teh["b"]                               # (1, te)
    gen = params["fused_generator"]
    slab = emb @ gen["wt"] + gen["b"]                                  # (1, TOTAL)
    return _slice_slab(slab, input_dim=input_dim, adapter_hidden=adapter_hidden)


# ---------------------------------------------------------------------------
# Parameter construction (deterministic, synthetic)
# ---------------------------------------------------------------------------
def init_params(key, *, input_dim, adapter_hidden, tei_size, te_size,
                num_hidden_layers, task_names):
    d, ah = input_dim, adapter_hidden
    ks = iter(jax.random.split(key, 16))
    scale = 0.02

    def lin(kk, fan_in, fan_out):
        kw, kb = jax.random.split(kk)
        wt = jax.random.normal(kw, (fan_in, fan_out), jnp.float32) * scale
        b = jax.random.normal(kb, (1, fan_out), jnp.float32) * scale
        return {"wt": wt, "b": b}

    # Fused generator slab layout (storing the generators pre-transposed is a
    # reparameterization of the synthetic init; forward semantics unchanged):
    #   [ Wd^T (d*ah) | bd (ah) | Wu^T (ah*d) | bu (d) | ln_w (d) | ln_b (d) ]
    total = d * ah + ah + ah * d + 3 * d
    kgw, kgb = jax.random.split(next(ks))
    gen_wt = jax.random.normal(kgw, (te_size, total), jnp.float32) * scale
    gen_b = jax.random.normal(kgb, (1, total), jnp.float32) * scale

    params = {
        "task_to_embeddings": {
            t: jax.random.normal(next(ks), (tei_size,), jnp.float32)
            for t in task_names.split(",")
        },
        "layer_id_embeddings": jax.random.normal(
            next(ks), (num_hidden_layers, tei_size), jnp.float32),
        "position_id_embeddings": jax.random.normal(
            next(ks), (2, tei_size), jnp.float32),
        # TODO(synk): config.task_embedding_hypernet is an arbitrary config-provided
        # module; modeled here as a single Linear(3*tei_size -> te_size).
        "task_embedding_hypernet": lin(next(ks), 3 * tei_size, te_size),
        "fused_generator": {"wt": gen_wt, "b": gen_b},
    }
    return params


# ---------------------------------------------------------------------------
# HyperAdapter forward
# ---------------------------------------------------------------------------
def hyper_adapter_forward(params, x, task_name, layer_id, position_id, *,
                          input_dim, adapter_hidden,
                          enable_adapter_layer_norm=True,
                          use_bf16_matmul=False, tile_rows=1024):
    # 1) Hypernet weight generation in plain XLA (no extra Pallas launch).
    dw_t, bd, uw_t, bu, lw, lb = hypernet_forward(
        params, task_name, layer_id, position_id,
        input_dim=input_dim, adapter_hidden=adapter_hidden)

    # 2) Zero-pad AH to a lane-dense multiple of 128 (numerically exact: the
    #    padded Wu rows are zero) and hoist the matmul-dtype cast here so the
    #    kernel never re-casts resident weights per grid step.
    ah_pad = _round_up(adapter_hidden, 128)
    if ah_pad != adapter_hidden:
        pad = ah_pad - adapter_hidden
        dw_t = jnp.pad(dw_t, ((0, 0), (0, pad)))
        bd = jnp.pad(bd, ((0, 0), (0, pad)))
        uw_t = jnp.pad(uw_t, ((0, pad), (0, 0)))
    mm_dtype = jnp.bfloat16 if use_bf16_matmul else jnp.float32
    dw_t = dw_t.astype(mm_dtype)
    uw_t = uw_t.astype(mm_dtype)

    # 3) Fused, tiled adapter hot path (single Pallas kernel).
    b, s, d = x.shape
    x2d = x.reshape(b * s, d)
    out2d = adapter_forward(x2d, dw_t, bd, uw_t, bu, lw, lb,
                            apply_layer_norm=enable_adapter_layer_norm,
                            tile_rows=tile_rows)
    return out2d.reshape(b, s, d)


# ---------------------------------------------------------------------------
# Pure-JAX reference (for sanity check)
# ---------------------------------------------------------------------------
def reference_forward(params, x, task_name, layer_id, position_id, *,
                      input_dim, adapter_hidden, enable_adapter_layer_norm=True):
    dw_t, bd, uw_t, bu, lw, lb = hypernet_forward(
        params, task_name, layer_id, position_id,
        input_dim=input_dim, adapter_hidden=adapter_hidden)

    h = x @ dw_t + bd.reshape(-1)                     # == F.linear(x, Wd, bd)
    h = jax.nn.gelu(h, approximate=False)
    y = h @ uw_t + bu.reshape(-1)                     # == F.linear(h, Wu, bu)
    if enable_adapter_layer_norm:
        mean = jnp.mean(y, axis=-1, keepdims=True)
        var = jnp.mean((y - mean) ** 2, axis=-1, keepdims=True)
        y = (y - mean) / jnp.sqrt(var + 1e-5) * lw.reshape(-1) + lb.reshape(-1)
    return y + x


# ---------------------------------------------------------------------------
if __name__ == "__main__":
    # config: task_embedding_input_size=16, task_embedding_size=16,
    #         adapter_hidden_size=8, num_hidden_layers=4, input_dim=32
    INPUT_DIM = 32
    ADAPTER_HIDDEN = 8
    TEI_SIZE = 16
    TE_SIZE = 16
    NUM_LAYERS = 4
    TASK_NAMES = "mnli,sst2"

    key = jax.random.PRNGKey(0)
    kp, kx1, kx2 = jax.random.split(key, 3)
    params = init_params(kp, input_dim=INPUT_DIM, adapter_hidden=ADAPTER_HIDDEN,
                         tei_size=TEI_SIZE, te_size=TE_SIZE,
                         num_hidden_layers=NUM_LAYERS, task_names=TASK_NAMES)

    # Case 1: small (batch=2, seq=8) -> N=16 rows, split into 2 tiles (megacore).
    x = jax.random.normal(kx1, (2, 8, INPUT_DIM), jnp.float32)
    out = hyper_adapter_forward(params, x, "mnli", layer_id=1, position_id=0,
                                input_dim=INPUT_DIM, adapter_hidden=ADAPTER_HIDDEN,
                                enable_adapter_layer_norm=True)
    out = jax.block_until_ready(out)
    ref = reference_forward(params, x, "mnli", layer_id=1, position_id=0,
                            input_dim=INPUT_DIM, adapter_hidden=ADAPTER_HIDDEN)
    assert out.shape == x.shape
    assert jnp.allclose(out, ref, atol=1e-4, rtol=1e-4), "mismatch vs reference (small)"

    # Case 2: N=544 rows -> balanced tiling (2 x 272, no pad copy).
    x2 = jax.random.normal(kx2, (4, 136, INPUT_DIM), jnp.float32)
    out2 = jax.block_until_ready(
        hyper_adapter_forward(params, x2, "sst2", layer_id=3, position_id=1,
                              input_dim=INPUT_DIM, adapter_hidden=ADAPTER_HIDDEN))
    ref2 = reference_forward(params, x2, "sst2", layer_id=3, position_id=1,
                             input_dim=INPUT_DIM, adapter_hidden=ADAPTER_HIDDEN)
    assert jnp.allclose(out2, ref2, atol=1e-4, rtol=1e-4), "mismatch vs reference (tiled)"

    # Case 3: bf16 matmuls (all generations; MXU bf16-native), f32 accumulation
    # and f32 elementwise/LN, weights pre-cast once in the wrapper.
    out_bf16 = jax.block_until_ready(
        hyper_adapter_forward(params, x2, "sst2", layer_id=3, position_id=1,
                              input_dim=INPUT_DIM, adapter_hidden=ADAPTER_HIDDEN,
                              use_bf16_matmul=True))
    assert jnp.allclose(out_bf16, ref2, atol=3e-2, rtol=3e-2), "mismatch vs reference (bf16 mm)"

    # Case 4: bf16 I/O streaming (HBM-bound kernel -> ~2x roofline shift),
    # f32 compute inside the kernel, output in the input dtype.
    x2_bf16 = x2.astype(jnp.bfloat16)
    out_io = jax.block_until_ready(
        hyper_adapter_forward(params, x2_bf16, "sst2", layer_id=3, position_id=1,
                              input_dim=INPUT_DIM, adapter_hidden=ADAPTER_HIDDEN))
    assert out_io.dtype == jnp.bfloat16
    ref_io = reference_forward(params, x2_bf16.astype(jnp.float32), "sst2",
                               layer_id=3, position_id=1,
                               input_dim=INPUT_DIM, adapter_hidden=ADAPTER_HIDDEN)
    assert jnp.allclose(out_io.astype(jnp.float32), ref_io, atol=5e-2, rtol=5e-2), \
        "mismatch vs reference (bf16 io)"

    print("KERNEL_OK")
</pallas_src>

<mosaic_0001>
module attributes {stable_mosaic.version = 11 : i64} {
  func.func @_adapter_kernel(%arg0: i32, %arg1: memref<8x32xf32, #tpu.memory_space<vmem>>, %arg2: memref<32x128xf32, #tpu.memory_space<vmem>>, %arg3: memref<1x128xf32, #tpu.memory_space<vmem>>, %arg4: memref<128x32xf32, #tpu.memory_space<vmem>>, %arg5: memref<1x32xf32, #tpu.memory_space<vmem>>, %arg6: memref<1x32xf32, #tpu.memory_space<vmem>>, %arg7: memref<1x32xf32, #tpu.memory_space<vmem>>, %arg8: memref<8x32xf32, #tpu.memory_space<vmem>>) attributes {dimension_semantics = [#tpu.dimension_semantics<parallel>], iteration_bounds = array<i64: 2>, scalar_prefetch = 0 : i64, scratch_operands = 0 : i64, tpu.core_type = #tpu.core_type<tc>, window_params = [{transform_indices = @transform_0, window_bounds = array<i64: 8, 32>}, {pipeline_mode = #tpu.pipeline_mode<synchronous>, transform_indices = @transform_1, window_bounds = array<i64: 32, 128>}, {pipeline_mode = #tpu.pipeline_mode<synchronous>, transform_indices = @transform_2, window_bounds = array<i64: 1, 128>}, {pipeline_mode = #tpu.pipeline_mode<synchronous>, transform_indices = @transform_3, window_bounds = array<i64: 128, 32>}, {pipeline_mode = #tpu.pipeline_mode<synchronous>, transform_indices = @transform_4, window_bounds = array<i64: 1, 32>}, {pipeline_mode = #tpu.pipeline_mode<synchronous>, transform_indices = @transform_5, window_bounds = array<i64: 1, 32>}, {pipeline_mode = #tpu.pipeline_mode<synchronous>, transform_indices = @transform_6, window_bounds = array<i64: 1, 32>}, {transform_indices = @transform_7, window_bounds = array<i64: 8, 32>}]} {
    %c0 = arith.constant 0 : index
    %c0_0 = arith.constant 0 : index
    %0 = vector.load %arg1[%c0, %c0_0] : memref<8x32xf32, #tpu.memory_space<vmem>>, vector<8x32xf32>
    %c0_1 = arith.constant 0 : index
    %c0_2 = arith.constant 0 : index
    %1 = vector.load %arg2[%c0_1, %c0_2] : memref<32x128xf32, #tpu.memory_space<vmem>>, vector<32x128xf32>
    %cst = arith.constant dense<0.000000e+00> : vector<8x128xf32>
    %2 = tpu.matmul %0, %1, %cst {dimension_numbers = #tpu.dot_dimension_numbers<[1], [0], [0], [1], [0, 0, 1, 1], [], []>} : vector<8x32xf32>, vector<32x128xf32>, vector<8x128xf32> -> vector<8x128xf32>
    %c0_3 = arith.constant 0 : index
    %c0_4 = arith.constant 0 : index
    %3 = vector.load %arg3[%c0_3, %c0_4] : memref<1x128xf32, #tpu.memory_space<vmem>>, vector<1x128xf32>
    %4 = vector.broadcast %3 : vector<1x128xf32> to vector<8x128xf32>
    %5 = arith.addf %2, %4 : vector<8x128xf32>
    %cst_5 = arith.constant 5.000000e-01 : f32
    %6 = vector.broadcast %cst_5 : f32 to vector<8x128xf32>
    %7 = arith.mulf %6, %5 : vector<8x128xf32>
    %cst_6 = arith.constant 0.707106769 : f32
    %8 = vector.broadcast %cst_6 : f32 to vector<8x128xf32>
    %9 = arith.mulf %5, %8 : vector<8x128xf32>
    %10 = math.erf %9 : vector<8x128xf32>
    %cst_7 = arith.constant 1.000000e+00 : f32
    %11 = vector.broadcast %cst_7 : f32 to vector<8x128xf32>
    %12 = arith.addf %11, %10 : vector<8x128xf32>
    %13 = arith.mulf %7, %12 : vector<8x128xf32>
    %c0_8 = arith.constant 0 : index
    %c0_9 = arith.constant 0 : index
    %14 = vector.load %arg4[%c0_8, %c0_9] : memref<128x32xf32, #tpu.memory_space<vmem>>, vector<128x32xf32>
    %cst_10 = arith.constant dense<0.000000e+00> : vector<8x32xf32>
    %15 = tpu.matmul %13, %14, %cst_10 {dimension_numbers = #tpu.dot_dimension_numbers<[1], [0], [0], [1], [0, 0, 1, 1], [], []>} : vector<8x128xf32>, vector<128x32xf32>, vector<8x32xf32> -> vector<8x32xf32>
    %c0_11 = arith.constant 0 : index
    %c0_12 = arith.constant 0 : index
    %16 = vector.load %arg5[%c0_11, %c0_12] : memref<1x32xf32, #tpu.memory_space<vmem>>, vector<1x32xf32>
    %17 = vector.broadcast %16 : vector<1x32xf32> to vector<8x32xf32>
    %18 = arith.addf %15, %17 : vector<8x32xf32>
    %cst_13 = arith.constant dense<0.000000e+00> : vector<8xf32>
    %19 = vector.multi_reduction <add>, %18, %cst_13 [1] : vector<8x32xf32> to vector<8xf32>
    %20 = vector.shape_cast %19 : vector<8xf32> to vector<8x1xf32>
    %cst_14 = arith.constant 3.125000e-02 : f32
    %21 = vector.broadcast %cst_14 : f32 to vector<8x1xf32>
    %22 = arith.mulf %20, %21 : vector<8x1xf32>
    %23 = vector.broadcast %22 : vector<8x1xf32> to vector<8x32xf32>
    %24 = arith.subf %18, %23 : vector<8x32xf32>
    %25 = arith.mulf %24, %24 : vector<8x32xf32>
    %cst_15 = arith.constant dense<0.000000e+00> : vector<8xf32>
    %26 = vector.multi_reduction <add>, %25, %cst_15 [1] : vector<8x32xf32> to vector<8xf32>
    %27 = vector.shape_cast %26 : vector<8xf32> to vector<8x1xf32>
    %cst_16 = arith.constant 3.125000e-02 : f32
    %28 = vector.broadcast %cst_16 : f32 to vector<8x1xf32>
    %29 = arith.mulf %27, %28 : vector<8x1xf32>
    %cst_17 = arith.constant 9.99999974E-6 : f32
    %30 = vector.broadcast %cst_17 : f32 to vector<8x1xf32>
    %31 = arith.addf %29, %30 : vector<8x1xf32>
    %32 = math.rsqrt %31 : vector<8x1xf32>
    %33 = vector.broadcast %32 : vector<8x1xf32> to vector<8x32xf32>
    %34 = arith.mulf %24, %33 : vector<8x32xf32>
    %c0_18 = arith.constant 0 : index
    %c0_19 = arith.constant 0 : index
    %35 = vector.load %arg6[%c0_18, %c0_19] : memref<1x32xf32, #tpu.memory_space<vmem>>, vector<1x32xf32>
    %36 = vector.broadcast %35 : vector<1x32xf32> to vector<8x32xf32>
    %37 = arith.mulf %34, %36 : vector<8x32xf32>
    %c0_20 = arith.constant 0 : index
    %c0_21 = arith.constant 0 : index
    %38 = vector.load %arg7[%c0_20, %c0_21] : memref<1x32xf32, #tpu.memory_space<vmem>>, vector<1x32xf32>
    %39 = vector.broadcast %38 : vector<1x32xf32> to vector<8x32xf32>
    %40 = arith.addf %37, %39 : vector<8x32xf32>
    %41 = arith.addf %40, %0 : vector<8x32xf32>
    %c0_22 = arith.constant 0 : index
    %c0_23 = arith.constant 0 : index
    %42 = vector.load %arg8[%c0_22, %c0_23] : memref<8x32xf32, #tpu.memory_space<vmem>>, vector<8x32xf32>
    tpu.vector_store %arg8[%c0_22, %c0_23], %41 {strides = array<i32>} : memref<8x32xf32, #tpu.memory_space<vmem>>, vector<8x32xf32>,
    return
  }
  func.func @transform_0(%arg0: i32) -> (i32, i32) {
    %c0_i32 = arith.constant 0 : i32
    %c0_i32_0 = arith.constant 0 : i32
    return %arg0, %c0_i32 : i32, i32
  }
  func.func @transform_1(%arg0: i32) -> (i32, i32) {
    %c0_i32 = arith.constant 0 : i32
    %c0_i32_0 = arith.constant 0 : i32
    %c0_i32_1 = arith.constant 0 : i32
    return %c0_i32, %c0_i32_0 : i32, i32
  }
  func.func @transform_2(%arg0: i32) -> (i32, i32) {
    %c0_i32 = arith.constant 0 : i32
    %c0_i32_0 = arith.constant 0 : i32
    %c0_i32_1 = arith.constant 0 : i32
    return %c0_i32, %c0_i32_0 : i32, i32
  }
  func.func @transform_3(%arg0: i32) -> (i32, i32) {
    %c0_i32 = arith.constant 0 : i32
    %c0_i32_0 = arith.constant 0 : i32
    %c0_i32_1 = arith.constant 0 : i32
    return %c0_i32, %c0_i32_0 : i32, i32
  }
  func.func @transform_4(%arg0: i32) -> (i32, i32) {
    %c0_i32 = arith.constant 0 : i32
    %c0_i32_0 = arith.constant 0 : i32
    %c0_i32_1 = arith.constant 0 : i32
    return %c0_i32, %c0_i32_0 : i32, i32
  }
  func.func @transform_5(%arg0: i32) -> (i32, i32) {
    %c0_i32 = arith.constant 0 : i32
    %c0_i32_0 = arith.constant 0 : i32
    %c0_i32_1 = arith.constant 0 : i32
    return %c0_i32, %c0_i32_0 : i32, i32
  }
  func.func @transform_6(%arg0: i32) -> (i32, i32) {
    %c0_i32 = arith.constant 0 : i32
    %c0_i32_0 = arith.constant 0 : i32
    %c0_i32_1 = arith.constant 0 : i32
    return %c0_i32, %c0_i32_0 : i32, i32
  }
  func.func @transform_7(%arg0: i32) -> (i32, i32) {
    %c0_i32 = arith.constant 0 : i32
    %c0_i32_0 = arith.constant 0 : i32
    return %arg0, %c0_i32 : i32, i32
  }
}

</mosaic_0001>

<bundles_post_ra>
// kernel: tpu_custom_call.1
= control target key start
LH: loop header
LB: loop body
LE: loop exit
PB: predicated region body
PF: predicated region fallthrough
CT: control target
= control target key end

     0   :  { %12 = vsyncpa [#allocation3], 0  ;;  %s828_s0 = inlined_call_operand.vmem [shape: f32[16,32], index: 0, kind: input, shape index: {}]   ;;  %s829_s1 = inlined_call_operand.vmem [shape: f32[32,128], index: 1, kind: input, shape index: {}]   ;;  %s830_s2 = inlined_call_operand.vmem [shape: f32[1,128], index: 2, kind: input, shape index: {}]   ;;  %s831_s3 = inlined_call_operand.vmem [shape: f32[128,32], index: 3, kind: input, shape index: {}]   ;;  %s832_s4 = inlined_call_operand.vmem [shape: f32[1,32], index: 4, kind: input, shape index: {}]   ;;  %s833_s5 = inlined_call_operand.vmem [shape: f32[1,32], index: 5, kind: input, shape index: {}]   ;;  %s834_s6 = inlined_call_operand.vmem [shape: f32[1,32], index: 6, kind: input, shape index: {}]   ;;  %s835_s7 = inlined_call_operand.hbm [shape: f32[16,32], index: 7, kind: output, shape index: {}]  }
   0x1   :  { %14 = vsyncpa [#allocation3 + $0x1], 0  ;;  %s663_s24 = smov 0   ;;  %s665_s25 = smov 0  }
   0x2   :  { %s667_s26 = smov 0   ;;  %s669_s27 = smov 0  }
   0x3 LB: > { %s684_s28 = sadd.s32 4294967295, %s621_s27   ;;  %s500_s29 = sadd.s32 4294967294, %s621_s27   ;;  %s621_s27 = sphi %s669_s27, %s841_s27   ;;  %s617_s26 = sphi %s667_s26, %s840_s26   ;;  %s613_s25 = sphi %s665_s25, %s839_s25   ;;  %s609_s24 = sphi %s663_s24, %s838_s24  }
   0x4   : > { %s688_s30 = sadd.s32 1, %s621_s27   ;;  %s179_s8 = sadd.s32 1, %s617_s26 }
   0x5   : > { %s176_s9 = ssub.s32 %s621_s27, %s688_s30  ;;  %p189_p0 = scmp.ne.s32.totalorder %s617_s26, %s613_s25 }
   0x6   : > { %p177_p1 = scmp.eq.s32.totalorder %s176_s9, 0  ;;  %p190_p2 = scmp.eq.s32.totalorder %s684_s28, 1 }
   0x7   : > { %p195_p3 = scmp.ne.s32.totalorder %s613_s25, %s609_s24  ;;  %p196_p4 = scmp.eq.s32.totalorder %s500_s29, 1 }
   0x8   : > { %s699_s10 = scalar_select %p177_p1, %s617_s26, %s179_s8  }
   0x9   : > { %p701_p5 = por %p190_p2, %p189_p0  ;;  %p705_p6 = por %p196_p4, %p195_p3 }
   0xa   : > { %p503_p7 = scmp.ge.s32.totalorder %s621_s27, 1  ;;  %p239_p8 = scmp.lt.s32.totalorder %s621_s27, 3 }
   0xc   : > { %p240_p9 = pnand %p503_p7, %p239_p8 }
   0xd   : > { %p270_p10 = scmp.lt.s32.totalorder (!%p240_p9), %s684_s28, 1  ;;  %s267_s20 = sand.u32 (!%p240_p9), 1, %s613_s25  }
   0xe   : > { %243 = sbr.rel (%p240_p9) target bundleno = 607 (0x25f), region = 48  ;;  %s504_s21 = sshll.u32 (!%p240_p9), %s267_s20, 3 }
   0xf   : > { %s269_s16 = scalar_lea.vmem (!%p240_p9), [#allocation2], %s504_s21  ;;  %s426_s18 = scalar_lea.sflag (!%p240_p9), [#allocation3], %s267_s20 }
  0x10   : > { %s438_s17 = sshll.u32 (!%p240_p9), %s269_s16, 4  ;;  %s579_s21 = scalar_lea.hbm (!%p240_p9), %s835_s7, 16  ;;  %s439_s17 = int_to_ptr.vmem [resolvable:$true] %s438_s17 }
  0x13   : > { %v278_v0 = vld [vmem:[%s829_s1 + $0x18] sm:$0xff]  ;;  %v277_v1 = vld [vmem:[%s829_s1 + $0x10] sm:$0xff]  ;;  %v276_v2 = vld [vmem:[%s829_s1 + $0x8] sm:$0xff]  ;;  %s271_s19 = scalar_select %p270_p10, %s684_s28, 1  ;;  %vm283_vm0 = vcmask 261120  }
  0x14   : > { %299 = vmatpush.msra.mxu0 %v278_v0  ;;  %v275_v3 = vld [vmem:[%s829_s1] sm:$0xff]  ;;  %v366_v5 = vld [vmem:[%s831_s3 + $0x78] sm:$0xff]  ;;  %v365_v6 = vld [vmem:[%s831_s3 + $0x70] sm:$0xff] }
  0x15   : > { %s505_s22 = sshll.u32 %s271_s19, 3  ;;  %371 = vmatpush.msra.mxu1 %v366_v5  ;;  %v364_v7 = vld [vmem:[%s831_s3 + $0x68] sm:$0xff]  ;;  %v363_v8 = vld [vmem:[%s831_s3 + $0x60] sm:$0xff]  ;;  %v362_v10 = vld [vmem:[%s831_s3 + $0x58] sm:$0xff] }
  0x16   : > { %300 = vmatpush.msra.mxu0 %v277_v1  ;;  %s273_s8 = scalar_lea.vmem %s828_s0, %s505_s22  ;;  %v551_v9 = vld [vmem:[%s830_s2] ss:$0 sm:$0xff]  ;;  %v361_v11 = vld [vmem:[%s831_s3 + $0x50] sm:$0xff]  ;;  %v360_v13 = vld [vmem:[%s831_s3 + $0x48] sm:$0xff]  ;;  %s509_s22 = sshll.u32 %s684_s28, 3 }
  0x17   : > { %v728_v4 = vld [vmem:[%s273_s8] sm:$0xff]  ;;  %372 = vmatpush.msra.mxu1 %v365_v6  ;;  %v358_v17 = vld [vmem:[%s831_s3 + $0x38] sm:$0xff]  ;;  %v357_v19 = vld [vmem:[%s831_s3 + $0x30] sm:$0xff]  ;;  %s436_s15 = scalar_lea.hbm %s835_s7, %s509_s22 }
  0x18   : > { %301 = vmatpush.msra.mxu0 %v276_v2  ;;  %v359_v15 = vld [vmem:[%s831_s3 + $0x40] sm:$0xff]  ;;  %v356_v21 = vld [vmem:[%s831_s3 + $0x28] sm:$0xff]  ;;  %v354_v27 = vld [vmem:[%s831_s3 + $0x18] sm:$0xff]  ;;  %s440_s28 = sshll.u32 %s436_s15, 4  ;;  %s441_s28 = int_to_ptr.hbm [resolvable:$true] %s440_s28 }
  0x19   : > { %373 = vmatpush.msra.mxu1 %v364_v7  ;;  %v355_v24 = vld [vmem:[%s831_s3 + $0x20] sm:$0xff]  ;;  %v353_v30 = vld [vmem:[%s831_s3 + $0x10] sm:$0xff]  ;;  %v352_v33 = vld [vmem:[%s831_s3 + $0x8] sm:$0xff]  ;;  %s573_s19 = sshra.s32 %s441_s28, 4  ;;  %s574_s19 = int_to_ptr.hbm [resolvable:$true] %s573_s19 }
  0x1a   : > { %302 = vmatpush.msra.mxu0 %v275_v3  ;;  %v351_v35 = vld [vmem:[%s831_s3] sm:$0xff]  ;;  %s575_s23 = scalar_lea.hbm %s574_s19, 8  ;;  %p580_p0 = scmp.lt.s32.totalorder %s574_s19, %s835_s7 }
  0x1b   : > { %506 = vmatmul.msk.f32.vlgmr.msra.gmra.mxu0 %vm283_vm0, %v728_v4  ;;  %374 = vmatpush.msra.mxu1 %v363_v8  ;;  %v552_v63 = vld [vmem:[%s832_s4] ss:$0 sm:$0xff]  ;;  %p576_p11 = scmp.ne.s32.totalorder %s574_s19, %s575_s23  ;;  %p581_p1 = scmp.lt.s32.totalorder %s579_s21, %s575_s23 }
  0x1d   : > { %375 = vmatpush.msra.mxu1 %v362_v10  ;;  %p577_p12 = pnand %p576_p11, %p701_p5  ;;  %p582_p2 = por %p581_p1, %p580_p0 }
  0x1f   : > { %376 = vmatpush.msra.mxu1 %v361_v11  ;;  %p578_p13 = pneg %p577_p12 }
  0x21   : > { %377 = vmatpush.msra.mxu1 %v360_v13  ;;  %p583_p3 = pnand %p582_p2, %p578_p13 }
  0x23   : > { %378 = vmatpush.msra.mxu1 %v359_v15 }
  0x25   : > { %379 = vmatpush.msra.mxu1 %v358_v17 }
  0x27   : > { %380 = vmatpush.msra.mxu1 %v357_v19 }
  0x29   : > { %381 = vmatpush.msra.mxu1 %v356_v21  ;;  %v554_v21 = vld [vmem:[%s834_s6] ss:$0 sm:$0xff] }
  0x2b   : > { %382 = vmatpush.msra.mxu1 %v355_v24 }
  0x2d   : > { %383 = vmatpush.msra.mxu1 %v354_v27 }
  0x2f   : > { %384 = vmatpush.msra.mxu1 %v353_v30 }
  0x31   : > { %385 = vmatpush.msra.mxu1 %v352_v33 }
  0x33   : > { %386 = vmatpush.msra.mxu1 %v351_v35 }
  0x98   : > { %v304_v12 = vpop.f32.mrf.mxu0 }
  0x99   : > { %v305_v14 = vadd.f32 %v551_v9, %v304_v12 }
  0x9b   : > { %v308_v16 = vmul.f32 0.70710677, %v305_v14  ;;  %v307_v60 = vmul.f32 0.5, %v305_v14 }
  0x9d   : > { %v309_v18 = vmul.f32 %v308_v16, %v308_v16 }
  0x9f   : > { %v310_v20 = vmin.f32 %v309_v18, 16.0  ;;  %v553_v18 = vld [vmem:[%s833_s5] ss:$0 sm:$0xff] }
  0xa1   : > { %v311_v22 = vmul.f32 2.1237322e-06, %v310_v20  ;;  %v322_v23 = vmul.f32 3.8918573e-05, %v310_v20 }
  0xa3   : > { %v312_v25 = vadd.f32 0.00028619796, %v311_v22  ;;  %v323_v26 = vadd.f32 0.001143296, %v322_v23 }
  0xa5   : > { %v313_v28 = vmul.f32 %v312_v25, %v310_v20  ;;  %v324_v29 = vmul.f32 %v323_v26, %v310_v20 }
  0xa7   : > { %v325_v31 = vadd.f32 0.014752088, %v324_v29  ;;  %v314_v32 = vadd.f32 0.0036580483, %v313_v28 }
  0xa9   : > { %v326_v34 = vmul.f32 %v325_v31, %v310_v20  ;;  %v315_v37 = vmul.f32 %v314_v32, %v310_v20 }
  0xab   : > { %v327_v36 = vadd.f32 0.112945676, %v326_v34  ;;  %v316_v40 = vadd.f32 0.05243302, %v315_v37 }
  0xad   : > { %v328_v38 = vmul.f32 %v327_v36, %v310_v20  ;;  %v317_v43 = vmul.f32 %v316_v40, %v310_v20 }
  0xaf   : > { %v329_v39 = vadd.f32 0.4994258, %v328_v38  ;;  %v318_v44 = vadd.f32 0.18741608, %v317_v43 }
  0xb1   : > { %v330_v41 = vmul.f32 %v329_v39, %v310_v20  ;;  %v319_v46 = vmul.f32 %v318_v44, %v310_v20 }
  0xb3   : > { %v331_v42 = vadd.f32 1.0, %v330_v41  ;;  %v320_v50 = vadd.f32 1.1283791, %v319_v46 }
  0xb5   : > { %555 = vrcp.f32 %v331_v42  ;;  %v343_v49 = vand.u32 2147483648, %v331_v42  ;;  %v341_v52 = vand.u32 2147483647, %v331_v42  ;;  %vm337_vm2 = vweird.f32 %v331_v42 }
  0xb6   : > { %v321_v55 = vmul.f32 %v320_v50, %v308_v16 }
  0xb7   : > { %v344_v54 = vor.u32 1.1754944e-38, %v343_v49  ;;  %vm342_vm4 = vcmp.eq.f32.partialorder %v341_v52, 8.507059e+37 }
  0xbb   : > { %v556_v45 = vpop.eup %555 }
  0xbc   : > { %v333_v47 = vmul.f32 %v556_v45, %v331_v42  ;;  %vm338_vm1 = vweird.f32 %v556_v45 }
  0xbd   : > { %vm339_vm3 = vmor %vm337_vm2, %vm338_vm1 }
  0xbe   : > { %v334_v48 = vsub.f32 1.0, %v333_v47 }
  0xc0   : > { %v335_v51 = vmul.f32 %v556_v45, %v334_v48 }
  0xc2   : > { %v336_v53 = vadd.f32 %v556_v45, %v335_v51 }
  0xc4   : > { %v340_v56 = vsel %vm339_vm3, %v556_v45, %v336_v53 }
  0xc5   : > { %v345_v57 = vsel %vm342_vm4, %v344_v54, %v340_v56 }
  0xc6   : > { %v346_v58 = vmul.f32 %v345_v57, %v321_v55 }
  0xc8   : > { %v507_v59 = vclamps-f32 %v346_v58, 1.0 }
  0xca   : > { %v349_v61 = vadd.f32 1.0, %v507_v59 }
  0xcc   : > { %v350_v62 = vmul.f32 %v349_v61, %v307_v60 }
  0xce   : > { %387 = vmatmul.f32.vlgmr.msra.gmra.mxu1 %v350_v62 }
 0x14b   : > { %v388_v0 = vpop.f32.mrf.mxu1 }
 0x14c   : > { %v389_v1 = vadd.f32 %v552_v63, %v388_v0 }
 0x14e   : > { %v391_v2 = vsel %vm283_vm0, %v389_v1, 0.0 }
 0x14f   : > { %392 = vadd.xlane.f32.xlu0 %v391_v2 }
 0x1c2   : > { %v393_v3 = vpop.xlane.xlu0 %392 }
 0x1c3   : > { %v394_v5 = vmul.f32 0.03125, %v393_v3 }
 0x1c5   : > { %v395_v6 = vsub.f32 %v389_v1, %v394_v5 }
 0x1c7   : > { %v396_v7 = vmul.f32 %v395_v6, %v395_v6 }
 0x1c9   : > { %v397_v8 = vsel %vm283_vm0, %v396_v7, 0.0 }
 0x1ca   : > { %398 = vadd.xlane.f32.xlu0 %v397_v8 }
 0x23d   : > { %v399_v9 = vpop.xlane.xlu0 %398 }
 0x23e   : > { %v400_v10 = vmul.f32 0.03125, %v399_v9 }
 0x240   : > { %v401_v11 = vadd.f32 1e-05, %v400_v10 }
 0x242   : > { %557 = vrsqrt.f32 %v401_v11  ;;  %vm408_vm6 = vweird.f32 %v401_v11 }
 0x248   : > { %v558_v12 = vpop.eup %557 }
 0x249   : > { %v403_v13 = vmul.f32 %v558_v12, %v401_v11  ;;  %vm409_vm5 = vweird.f32 %v558_v12 }
 0x24a   : > { %vm410_vm7 = vmor %vm408_vm6, %vm409_vm5 }
 0x24b   : > { %v404_v14 = vmul.f32 %v558_v12, %v403_v13 }
 0x24d   : > { %v405_v15 = vmul.f32 0.5, %v404_v14 }
 0x24f   : > { %v406_v16 = vsub.f32 1.5, %v405_v15 }
 0x251   : > { %v407_v17 = vmul.f32 %v558_v12, %v406_v16 }
 0x253   : > { %v411_v19 = vsel %vm410_vm7, %v558_v12, %v407_v17 }
 0x254   : > { %v412_v20 = vmul.f32 %v411_v19, %v395_v6 }
 0x256   : > { %v417_v22 = vmul.f32 %v553_v18, %v412_v20 }
 0x258   : > { %v422_v23 = vadd.f32 %v554_v21, %v417_v22 }
 0x25a   : > { %v423_v24 = vadd.f32 %v422_v23, %v728_v4 }
 0x25c   : > { %424 = vst.msk [vmem:[%s269_s16] sm:$0xff] %vm283_vm0, %v423_v24 }
 0x25d   : > { %586 = shalt.err (!%p583_p3)
}
 0x25e   : > { %512 = dma.vmem_to_hbm [thread:$0]  (%p701_p5), %s439_s17, 128, %s441_s28, %s426_s18  }
 0x25f PF: > { %p518_p4 = scmp.ge.s32.totalorder %s621_s27, 2  ;;  %s452_s20 = sand.u32 1, %s609_s24  }
 0x260   : > { %s453_s13 = scalar_lea.sflag [#allocation3], %s452_s20 }
 0x261   : > { %p515_p7 = pnand %p518_p4, %p705_p6 }
 0x263   : > { %p516_p8 = pneg %p515_p7 }
 0x265   : > { %604 = dma.done.wait (%p516_p8), %s453_s13, 128  }
 0x266   : > { %606 = vsyncadd (%p516_p8), %s453_s13, 4294967168  ;;  %p17_p9 = scmp.ge.s32.totalorder %s688_s30, 4   ;;  %s838_s24 = smov %s613_s25 }
 0x267   : > { %s839_s25 = smov %s617_s26  ;;  %s840_s26 = smov %s699_s10 }
 0x268   : > { %s841_s27 = smov %s688_s30  ;;  %19 = sbr.rel (!%p17_p9) target bundleno = 3 (0x3), region = 83 }
 0x26d   :  { %459 = vsyncpa [#allocation3], 1 }
 0x26e   :  { %461 = vsyncpa [#allocation3 + $0x1], 1 }

</bundles_post_ra>
